<compile_context>
chip_gen: v7x
topology: tpu7x:2x2x1
jax: 0.10.0
libtpu: 0.0.40
codegen_flags: <defaults>
</compile_context>

<pallas_src>
import functools

import jax
import jax.numpy as jnp
from jax.experimental import pallas as pl
from jax.experimental.pallas import tpu as pltpu


# --------------------------------------------------------------------------
# Kernel
# --------------------------------------------------------------------------
def _timestep_embedder_kernel(t_ref, w1_ref, b1_ref, w2_ref, b2_ref, o_ref):
    # t_ref : (TN, 1)    f32    tile of flattened timesteps
    # w1_ref: (1, Dp)    f32    Linear(1, D) weight as a row (padded to Dp)
    # b1_ref: (1, Dp)    f32
    # w2_ref: (Dp, Dp)   bf16   Linear(D, D) weight, PRE-TRANSPOSED to [in, out]
    # b2_ref: (1, Dp)    f32
    # o_ref : (TN, Dp)   f32
    t = t_ref[...]                                           # (TN, 1)

    # ---- Linear(1, D): outer product -> VPU broadcast (no MXU pass) --------
    h = t * w1_ref[...] + b1_ref[...]                        # (TN, Dp) f32

    # ---- SiLU in f32 (EUP handles the sigmoid exp; v5e has no bf16 VPU) ----
    h = h * jax.nn.sigmoid(h)

    # ---- Linear(D, D): plain contraction with the pre-transposed weight ----
    # h_bf16 @ w2[in, out]  ==  h @ w2_torch.T ; f32 accumulation on the MXU.
    out = jnp.dot(
        h.astype(jnp.bfloat16), w2_ref[...],
        preferred_element_type=jnp.float32,
    ) + b2_ref[...]                                          # (TN, Dp) f32

    o_ref[...] = out


# --------------------------------------------------------------------------
# One-time parameter preparation (hoisted out of the per-call forward path)
# --------------------------------------------------------------------------
def prepare_params(w1, b1, w2, b2, *, lane=128):
    """Pad / transpose / cast weights once at init time.

    w1: (dim, 1), b1: (dim,), w2: (dim, dim) PyTorch [out, in], b2: (dim,).
    Padding is with zeros, so padded lanes of h are 0 and padded 'in' rows of
    the transposed w2 contribute nothing -- valid lanes are unchanged.
    w2 is stored transposed ([in, out]) and in bfloat16.
    """
    dim = w1.shape[0]
    dp = ((dim + lane - 1) // lane) * lane

    w1_row = jnp.zeros((1, dp), jnp.float32).at[0, :dim].set(
        w1.reshape(dim).astype(jnp.float32))
    b1_row = jnp.zeros((1, dp), jnp.float32).at[0, :dim].set(
        b1.astype(jnp.float32))
    # Pre-transpose to [in, out] so the kernel does a plain A @ B contraction
    # (no per-step XLU transpose of the resident weight), then cast to bf16.
    w2_t = jnp.zeros((dp, dp), jnp.float32).at[:dim, :dim].set(
        jnp.transpose(w2).astype(jnp.float32)).astype(jnp.bfloat16)
    b2_row = jnp.zeros((1, dp), jnp.float32).at[0, :dim].set(
        b2.astype(jnp.float32))

    return {"dim": dim, "dp": dp,
            "w1": w1_row, "b1": b1_row, "w2": w2_t, "b2": b2_row}


# --------------------------------------------------------------------------
# Forward wrapper
# --------------------------------------------------------------------------
@functools.partial(jax.jit, static_argnames=("tn",))
def _forward(t2d_pad, w1, b1, w2, b2, *, tn):
    n_pad = t2d_pad.shape[0]
    dp = w1.shape[1]
    grid = (n_pad // tn,)

    # Explicit VMEM budget: resident bf16 w2 (double-buffered), f32 biases,
    # double-buffered t/out tiles, the (TN, Dp) f32 intermediate h plus its
    # bf16 copy fed to the MXU, plus headroom.  Capped at 48 MiB so large
    # configs stay under v7x's 64 MiB physical VMEM per TensorCore.
    # TODO(synk): if ever VMEM-tight (huge dp), single-buffer the constant
    # weight specs via pipeline_mode=pl.Buffered(1) on w2.
    need = (2 * dp * dp * 2          # w2, bf16, double-buffered
            + 2 * 3 * dp * 4         # w1 / b1 / b2, f32, double-buffered
            + 2 * tn * 1 * 4         # t tiles
            + 2 * tn * dp * 4        # out tiles
            + tn * dp * (4 + 2))     # intermediate h (f32) + bf16 copy
    vmem_limit = int(min(max(need + (4 << 20), 16 << 20), 48 << 20))

    return pl.pallas_call(
        _timestep_embedder_kernel,
        out_shape=jax.ShapeDtypeStruct((n_pad, dp), jnp.float32),
        grid=grid,
        in_specs=[
            pl.BlockSpec((tn, 1), lambda i: (i, 0)),     # t tile (pipelined)
            pl.BlockSpec((1, dp), lambda i: (0, 0)),     # w1 (resident)
            pl.BlockSpec((1, dp), lambda i: (0, 0)),     # b1 (resident)
            pl.BlockSpec((dp, dp), lambda i: (0, 0)),    # w2.T bf16 (resident)
            pl.BlockSpec((1, dp), lambda i: (0, 0)),     # b2 (resident)
        ],
        out_specs=pl.BlockSpec((tn, dp), lambda i: (i, 0)),
        compiler_params=pltpu.CompilerParams(
            dimension_semantics=("parallel",),           # shard N across TCs
            vmem_limit_bytes=vmem_limit),
    )(t2d_pad, w1, b1, w2, b2)


def timestep_embedder(t, params, *, tn=1024):
    """Pallas forward of TimestepEmbedder.

    Args:
      t:      any-shape float array of timesteps (flattened like torch .view(-1,1)).
      params: output of prepare_params() (done once at init, not per call).
      tn:     target batch tile size (rows per grid step).
    Returns:
      (N, dim) float32, N = t.size.
    """
    dim, dp = params["dim"], params["dp"]
    t2d = t.reshape(-1, 1).astype(jnp.float32)
    n = t2d.shape[0]

    # Pad N only to a multiple of 8 (sublane granularity), then split ~evenly
    # across grid steps so padding waste is < 8 rows per step.  Use >= 2 steps
    # whenever possible so both v7x TensorCores get work (harmless on 1-TC
    # v5e/v6e: one extra ~0.35us grid step).
    n8 = ((n + 7) // 8) * 8
    min_steps = 2 if n8 >= 16 else 1
    steps = max((n8 + tn - 1) // tn, min_steps)
    tn_eff = (((n8 // 8) + steps - 1) // steps) * 8      # multiple of 8
    n_pad = steps * tn_eff                               # >= n8
    if n_pad != n:
        t2d = jnp.pad(t2d, ((0, n_pad - n), (0, 0)))

    out = _forward(t2d, params["w1"], params["b1"], params["w2"], params["b2"],
                   tn=tn_eff)

    # Only slice when padding actually changed the shape (avoids a needless
    # extra HBM pass over the result for dim % 128 == 0 and aligned N).
    if n_pad != n:
        out = out[:n]
    if dp != dim:
        out = out[:, :dim]
    return out


# --------------------------------------------------------------------------
# Plain-JAX reference (matches the PyTorch nn.Sequential forward)
# --------------------------------------------------------------------------
def _reference(t, w1, b1, w2, b2):
    x = t.reshape(-1, 1).astype(jnp.float32)
    h = x @ w1.T + b1
    h = h * jax.nn.sigmoid(h)
    return h @ w2.T + b2


if __name__ == "__main__":
    dim = 32       # embedding dim
    batch = 8      # number of timesteps

    key = jax.random.PRNGKey(0)
    k_t, k_w1, k_b1, k_w2, k_b2 = jax.random.split(key, 5)

    # Deterministic synthetic parameters (PyTorch layout: weight = [out, in]).
    t = jax.random.uniform(k_t, (batch,), dtype=jnp.float32) * 1000.0
    w1 = jax.random.normal(k_w1, (dim, 1), dtype=jnp.float32) * 0.5
    b1 = jax.random.normal(k_b1, (dim,), dtype=jnp.float32) * 0.1
    w2 = jax.random.normal(k_w2, (dim, dim), dtype=jnp.float32) * (1.0 / jnp.sqrt(dim))
    b2 = jax.random.normal(k_b2, (dim,), dtype=jnp.float32) * 0.1

    params = prepare_params(w1, b1, w2, b2)        # one-time weight prep
    out = timestep_embedder(t, params)
    out = jax.block_until_ready(out)

    ref = _reference(t, w1, b1, w2, b2)
    assert out.shape == (batch, dim), out.shape
    # bf16 weights/activations with f32 accumulation -> relaxed tolerance.
    rel_err = float(jnp.max(jnp.abs(out - ref)) / (jnp.max(jnp.abs(ref)) + 1e-6))
    assert rel_err < 2e-2, f"relative err {rel_err}"

    print("KERNEL_OK")
</pallas_src>

<mosaic_0001>
module attributes {stable_mosaic.version = 11 : i64} {
  func.func @_timestep_embedder_kernel(%arg0: i32, %arg1: memref<8x1xf32, #tpu.memory_space<vmem>>, %arg2: memref<1x128xf32, #tpu.memory_space<vmem>>, %arg3: memref<1x128xf32, #tpu.memory_space<vmem>>, %arg4: memref<128x128xbf16, #tpu.memory_space<vmem>>, %arg5: memref<1x128xf32, #tpu.memory_space<vmem>>, %arg6: memref<8x128xf32, #tpu.memory_space<vmem>>) attributes {dimension_semantics = [#tpu.dimension_semantics<parallel>], iteration_bounds = array<i64: 1>, scalar_prefetch = 0 : i64, scratch_operands = 0 : i64, tpu.core_type = #tpu.core_type<tc>, window_params = [{transform_indices = @transform_0, window_bounds = array<i64: 8, 1>}, {pipeline_mode = #tpu.pipeline_mode<synchronous>, transform_indices = @transform_1, window_bounds = array<i64: 1, 128>}, {pipeline_mode = #tpu.pipeline_mode<synchronous>, transform_indices = @transform_2, window_bounds = array<i64: 1, 128>}, {pipeline_mode = #tpu.pipeline_mode<synchronous>, transform_indices = @transform_3, window_bounds = array<i64: 128, 128>}, {pipeline_mode = #tpu.pipeline_mode<synchronous>, transform_indices = @transform_4, window_bounds = array<i64: 1, 128>}, {transform_indices = @transform_5, window_bounds = array<i64: 8, 128>}]} {
    %c0 = arith.constant 0 : index
    %c0_0 = arith.constant 0 : index
    %0 = vector.load %arg1[%c0, %c0_0] : memref<8x1xf32, #tpu.memory_space<vmem>>, vector<8x1xf32>
    %c0_1 = arith.constant 0 : index
    %c0_2 = arith.constant 0 : index
    %1 = vector.load %arg2[%c0_1, %c0_2] : memref<1x128xf32, #tpu.memory_space<vmem>>, vector<1x128xf32>
    %2 = vector.broadcast %0 : vector<8x1xf32> to vector<8x128xf32>
    %3 = vector.broadcast %1 : vector<1x128xf32> to vector<8x128xf32>
    %4 = arith.mulf %2, %3 : vector<8x128xf32>
    %c0_3 = arith.constant 0 : index
    %c0_4 = arith.constant 0 : index
    %5 = vector.load %arg3[%c0_3, %c0_4] : memref<1x128xf32, #tpu.memory_space<vmem>>, vector<1x128xf32>
    %6 = vector.broadcast %5 : vector<1x128xf32> to vector<8x128xf32>
    %7 = arith.addf %4, %6 : vector<8x128xf32>
    %8 = arith.negf %7 : vector<8x128xf32>
    %9 = math.exp %8 : vector<8x128xf32>
    %cst = arith.constant 1.000000e+00 : f32
    %10 = vector.broadcast %cst : f32 to vector<8x128xf32>
    %11 = arith.addf %10, %9 : vector<8x128xf32>
    %12 = arith.divf %10, %11 : vector<8x128xf32>
    %13 = arith.mulf %7, %12 : vector<8x128xf32>
    %14 = arith.truncf %13 : vector<8x128xf32> to vector<8x128xbf16>
    %c0_5 = arith.constant 0 : index
    %c0_6 = arith.constant 0 : index
    %15 = vector.load %arg4[%c0_5, %c0_6] : memref<128x128xbf16, #tpu.memory_space<vmem>>, vector<128x128xbf16>
    %cst_7 = arith.constant dense<0.000000e+00> : vector<8x128xf32>
    %16 = tpu.matmul %14, %15, %cst_7 {dimension_numbers = #tpu.dot_dimension_numbers<[1], [0], [0], [1], [0, 0, 1, 1], [], []>} : vector<8x128xbf16>, vector<128x128xbf16>, vector<8x128xf32> -> vector<8x128xf32>
    %c0_8 = arith.constant 0 : index
    %c0_9 = arith.constant 0 : index
    %17 = vector.load %arg5[%c0_8, %c0_9] : memref<1x128xf32, #tpu.memory_space<vmem>>, vector<1x128xf32>
    %18 = vector.broadcast %17 : vector<1x128xf32> to vector<8x128xf32>
    %19 = arith.addf %16, %18 : vector<8x128xf32>
    %c0_10 = arith.constant 0 : index
    %c0_11 = arith.constant 0 : index
    %20 = vector.load %arg6[%c0_10, %c0_11] : memref<8x128xf32, #tpu.memory_space<vmem>>, vector<8x128xf32>
    tpu.vector_store %arg6[%c0_10, %c0_11], %19 {strides = array<i32>} : memref<8x128xf32, #tpu.memory_space<vmem>>, vector<8x128xf32>,
    return
  }
  func.func @transform_0(%arg0: i32) -> (i32, i32) {
    %c0_i32 = arith.constant 0 : i32
    %c0_i32_0 = arith.constant 0 : i32
    return %arg0, %c0_i32 : i32, i32
  }
  func.func @transform_1(%arg0: i32) -> (i32, i32) {
    %c0_i32 = arith.constant 0 : i32
    %c0_i32_0 = arith.constant 0 : i32
    %c0_i32_1 = arith.constant 0 : i32
    return %c0_i32, %c0_i32_0 : i32, i32
  }
  func.func @transform_2(%arg0: i32) -> (i32, i32) {
    %c0_i32 = arith.constant 0 : i32
    %c0_i32_0 = arith.constant 0 : i32
    %c0_i32_1 = arith.constant 0 : i32
    return %c0_i32, %c0_i32_0 : i32, i32
  }
  func.func @transform_3(%arg0: i32) -> (i32, i32) {
    %c0_i32 = arith.constant 0 : i32
    %c0_i32_0 = arith.constant 0 : i32
    %c0_i32_1 = arith.constant 0 : i32
    return %c0_i32, %c0_i32_0 : i32, i32
  }
  func.func @transform_4(%arg0: i32) -> (i32, i32) {
    %c0_i32 = arith.constant 0 : i32
    %c0_i32_0 = arith.constant 0 : i32
    %c0_i32_1 = arith.constant 0 : i32
    return %c0_i32, %c0_i32_0 : i32, i32
  }
  func.func @transform_5(%arg0: i32) -> (i32, i32) {
    %c0_i32 = arith.constant 0 : i32
    %c0_i32_0 = arith.constant 0 : i32
    return %arg0, %c0_i32 : i32, i32
  }
}

</mosaic_0001>

<bundles_post_ra>
// kernel: _forward.1
= control target key start
LH: loop header
LB: loop body
LE: loop exit
PB: predicated region body
PF: predicated region fallthrough
CT: control target
= control target key end

     0   :  { %10 = vsyncpa [#allocation3], 0  ;;  %s375_s0 = inlined_call_operand.vmem [shape: f32[8,1], index: 0, kind: input, shape index: {}]   ;;  %s376_s1 = inlined_call_operand.vmem [shape: f32[1,128], index: 1, kind: input, shape index: {}]   ;;  %s377_s2 = inlined_call_operand.vmem [shape: f32[1,128], index: 2, kind: input, shape index: {}]   ;;  %s378_s3 = inlined_call_operand.hbm [shape: bf16[128,128], index: 3, kind: input, shape index: {}]   ;;  %s379_s4 = inlined_call_operand.vmem [shape: f32[1,128], index: 4, kind: input, shape index: {}]   ;;  %s380_s5 = inlined_call_operand.hbm [shape: f32[8,128], index: 5, kind: output, shape index: {}]  }
   0x1   :  { %11 = vsyncpa [#allocation4], 0  ;;  %s302_s18 = smov [#allocation2]   ;;  %s254_s22 = scalar_lea.hbm %s378_s3, 1024 }
   0x2   :  { %s23_s19 = sshll.u32 %s302_s18, 4  ;;  %p255_p0 = scmp.ne.s32.totalorder %s378_s3, %s254_s22  ;;  %s24_s19 = int_to_ptr.vmem [resolvable:$true] %s23_s19 }
   0x3   :  { %p258_p1 = scmp.lt.u32.totalorder %s254_s22, %s378_s3 }
   0x5   :  { %p260_p2 = pnand %p258_p1, %p255_p0 }
   0x7   :  { %263 = shalt.err (!%p260_p2)
}
   0x8   :  { %s264_s27 = scalar_lea.vmem %s24_s19, 1024  ;;  %p269_p4 = scmp.lt.s32.totalorder %s24_s19, %s24_s19 }
   0x9   :  { %p265_p3 = scmp.ne.s32.totalorder %s24_s19, %s264_s27  ;;  %p270_p5 = scmp.lt.s32.totalorder %s264_s27, %s264_s27 }
   0xb   :  { %p271_p6 = por %p270_p5, %p269_p4 }
   0xd   :  { %p272_p7 = pnand %p271_p6, %p265_p3 }
   0xf   :  { %275 = shalt.err (!%p272_p7)
}
  0x10   :  { %s303_s28 = smov 64   ;;  %s304_s29 = smov 4  }
  0x11   :  { %29 = dma.hbm_to_vmem [thread:$0]  %s378_s3, 1024, %s24_s19, [#allocation3], %s303_s28, %s303_s28, %s304_s29  }
  0x12   :  { %298 = dma.done.wait [#allocation3], 1024  }
  0x13   :  { %299 = vsyncadd [#allocation3], 4294966272  ;;  %v305_v0 = vmov 0   ;;  %v36_v1 = vld [vmem:[%s375_s0] sm:$0xff]  ;;  %v306_v3 = vmov 0.0   ;;  %v243_v4 = vld [vmem:[#allocation2 + $0x8] sm:$0xff]  }
  0x14   :  { %241 = vset.pattern.permute.xlu0 %v305_v0  ;;  %v242_v2 = vld [vmem:[#allocation2] sm:$0xff]   ;;  %214 = vmatprep.subr.bf16.mxu0 %v306_v3  ;;  %v244_v5 = vld [vmem:[#allocation2 + $0x10] sm:$0xff]   ;;  %v245_v6 = vld [vmem:[#allocation2 + $0x18] sm:$0xff]   ;;  %vm307_vm0 = vmmov 0  }
  0x15   :  { %40 = vperm.xlu0 %241, %v36_v1   ;;  %215 = vmatpush3.bf16.msra.mxu0 %v242_v2  ;;  %v246_v7 = vld [vmem:[#allocation2 + $0x20] sm:$0xff]   ;;  %v247_v8 = vld [vmem:[#allocation2 + $0x28] sm:$0xff]   ;;  %v248_v9 = vld [vmem:[#allocation2 + $0x30] sm:$0xff]  }
  0x16   :  { %216 = vmatprep.subr.bf16.mxu0 %v306_v3  ;;  %230 = vmatprep.mubr.msk.bf16.mxu0 %vm307_vm0, %v306_v3  ;;  %v249_v10 = vld [vmem:[#allocation2 + $0x38] sm:$0xff]   ;;  %v193_v11 = vld [vmem:[%s376_s1] ss:$0 sm:$0xff]  ;;  %s308_s1 = smov [#allocation5]  }
  0x17   :  { %v194_v12 = vld [vmem:[%s377_s2] ss:$0 sm:$0xff]  ;;  %s184_s13 = sshll.u32 %s308_s1, 4  ;;  %s185_s13 = int_to_ptr.vmem [resolvable:$true] %s184_s13 }
  0x18   :  { %v196_v22 = vld [vmem:[%s379_s4] ss:$0 sm:$0xff]  ;;  %s276_s2 = scalar_lea.vmem %s185_s13, 128  ;;  %p281_p9 = scmp.lt.s32.totalorder %s185_s13, %s185_s13 }
  0x19   :  { %217 = vmatpush3.bf16.msra.mxu0 %v243_v4  ;;  %p277_p8 = scmp.ne.s32.totalorder %s185_s13, %s276_s2  ;;  %p282_p10 = scmp.lt.s32.totalorder %s276_s2, %s276_s2 }
  0x1a   :  { %218 = vmatprep.subr.bf16.mxu0 %v306_v3 }
  0x1b   :  { %p283_p11 = por %p282_p10, %p281_p9 }
  0x1d   :  { %219 = vmatpush3.bf16.msra.mxu0 %v244_v5  ;;  %p284_p12 = pnand %p283_p11, %p277_p8 }
  0x1e   :  { %220 = vmatprep.subr.bf16.mxu0 %v306_v3 }
  0x21   :  { %221 = vmatpush3.bf16.msra.mxu0 %v245_v6 }
  0x22   :  { %222 = vmatprep.subr.bf16.mxu0 %v306_v3 }
  0x25   :  { %223 = vmatpush3.bf16.msra.mxu0 %v246_v7 }
  0x26   :  { %224 = vmatprep.subr.bf16.mxu0 %v306_v3 }
  0x29   :  { %225 = vmatpush3.bf16.msra.mxu0 %v247_v8 }
  0x2a   :  { %226 = vmatprep.subr.bf16.mxu0 %v306_v3 }
  0x2d   :  { %227 = vmatpush3.bf16.msra.mxu0 %v248_v9 }
  0x2e   :  { %228 = vmatprep.subr.bf16.mxu0 %v306_v3 }
  0x31   :  { %229 = vmatpush3.bf16.msra.mxu0 %v249_v10 }
  0x94   :  { %v41_v13 = vpop.permute.xlu0 %40 }
  0x95   :  { %v49_v14 = vmul.f32 %v193_v11, %v41_v13 }
  0x97   :  { %v57_v15 = vadd.f32 %v194_v12, %v49_v14 }
  0x99   :  { %v195_v16 = vmul.f32 -1.442695, %v57_v15 }
  0x9b   :  { %250 = vpow2.f32 %v195_v16 }
  0xa5   :  { %v251_v17 = vpop.eup %250 }
  0xa6   :  { %v61_v18 = vadd.f32 1.0, %v251_v17 }
  0xa8   :  { %252 = vrcp.f32 %v61_v18 }
  0xb2   :  { %v253_v19 = vpop.eup %252 }
  0xb3   :  { %v64_v20 = vmul.f32 %v253_v19, %v57_v15 }
  0xb5   :  { %v65_v21 = vpack.c.bf16 %v64_v20, %v64_v20 }
  0xb7   :  { %231 = vmatmul.mubr.bf16.vlgmr.msra.gmra.mrb[0].mxu0 %v65_v21 }
 0x18a   :  { %v171_v23 = vpop.f32.mrb[0].mxu0 }
 0x18b   :  { %v172_v24 = vadd.f32 %v196_v22, %v171_v23  ;;  %v232_v25 = vpop.f32.mrb[1].mxu0 }
 0x18c   :  { %v174_v26 = vpop.f32.mrb[2].mxu0 }
 0x18d   :  { %177 = vst [vmem:[#allocation5] sm:$0xff] %v172_v24  ;;  %v233_v27 = vpop.f32.mrb[3].mxu0 }
 0x18e   :  { %287 = shalt.err (!%p284_p12)
}
 0x18f   :  { %s288_s4 = scalar_lea.hbm %s380_s5, 128 }
 0x190   :  { %p289_p13 = scmp.ne.s32.totalorder %s380_s5, %s288_s4  ;;  %p292_p0 = scmp.lt.u32.totalorder %s288_s4, %s380_s5 }
 0x192   :  { %p294_p1 = pnand %p292_p0, %p289_p13 }
 0x194   :  { %297 = shalt.err (!%p294_p1)
}
 0x195   :  { %187 = dma.vmem_to_hbm [thread:$0]  %s185_s13, 128, %s380_s5, [#allocation4]  }
 0x196   :  { %300 = dma.done.wait [#allocation4], 128  }
 0x197   :  { %301 = vsyncadd [#allocation4], 4294967168 }
 0x198   :  { %191 = vsyncpa [#allocation3], 1 }
 0x199   :  { %192 = vsyncpa [#allocation4], 1 }

</bundles_post_ra>
